<compile_context>
chip_gen: v6e
topology: v6e:2x2x1
jax: 0.10.0
libtpu: 0.0.40
codegen_flags: <defaults>
</compile_context>

<pallas_src>
import numpy as np
import jax
import jax.numpy as jnp
from jax import lax
from jax.experimental import pallas as pl
from jax.experimental.pallas import tpu as pltpu

_LANE = 128
_SUBLANE = 8


def _round_up(n, m):
    return ((n + m - 1) // m) * m


def _cdiv(a, b):
    return -(-a // b)


def _vmem_capacity_bytes():
    """Per-core VMEM capacity; conservative 64 MiB (v7x) if the query fails."""
    cap = 64 << 20
    try:
        info = pltpu.get_tpu_info()
        cap = int(getattr(info, "vmem_capacity_bytes", cap))
    except Exception:
        pass
    return cap


# ---------------------------------------------------------------------------
# Path 1: MXU one-hot gather (per-group block-diagonal table)
# ---------------------------------------------------------------------------

def _mxu_gather_kernel(num_slots, v_pad):
    def kernel(idx_ref, tbl_ref, out_ref):
        # idx_ref: (TB, G) int32   combined (x + offsets) indices, -1 = padding
        # tbl_ref: (G*V_pad, GW) f32  block-diagonal table slice for this group
        # out_ref: (TB, GW) f32    lane-dense output tile (GW multiple of 128)
        idx = idx_ref[...]
        tb = idx.shape[0]
        iota_v = lax.broadcasted_iota(jnp.int32, (tb, v_pad), 1)
        # One narrow compare per field slot over its own 128-aligned V_pad column
        # slice + a single concatenate: ~2 passes over the group width instead of
        # the old (3F-1) full-width passes.  -1 padding never matches -> zeros.
        parts = [
            (iota_v == idx[:, j:j + 1]).astype(jnp.float32)
            for j in range(num_slots)
        ]
        onehot = parts[0] if num_slots == 1 else jnp.concatenate(parts, axis=1)
        # Single MXU matmul per group does the gather for all TB rows at once and
        # lands directly in the lane-flattened output layout.
        out_ref[...] = jnp.dot(onehot, tbl_ref[...],
                               preferred_element_type=jnp.float32)
    return kernel


def _mxu_plan(num_fields, embed_dim, vocab, mxu_n_tile, vmem_budget):
    v_pad = _round_up(max(vocab, 1), _LANE)
    g = min(num_fields, max(1, mxu_n_tile // max(embed_dim, 1)))
    if embed_dim > mxu_n_tile:
        g = 1

    def tbl_bytes(g_):
        # double-buffered per-group block-diagonal slice
        return 2 * (g_ * v_pad) * _round_up(g_ * embed_dim, _LANE) * 4

    # Shrink the group while its table slice would crowd out batch tiles.
    while g > 1 and tbl_bytes(g) > 0.4 * vmem_budget:
        g = max(1, g // 2)

    gw = _round_up(g * embed_dim, _LANE)
    ng = _cdiv(num_fields, g)
    return dict(
        v_pad=v_pad, g=g, gw=gw, ng=ng, f_pad=ng * g,
        table_block_bytes=tbl_bytes(g),
        fits=tbl_bytes(g) <= 0.4 * vmem_budget,   # dispatch guard (item 6)
    )


def _build_grouped_table(weight, plan, num_fields, embed_dim):
    """Per-group block-diagonal table, built ONCE per set of weights (item 10)."""
    v = weight.shape[0]
    g, gw, ng, v_pad = plan["g"], plan["gw"], plan["ng"], plan["v_pad"]
    tbl = np.zeros((ng, g * v_pad, gw), dtype=np.float32)
    w = np.asarray(weight, dtype=np.float32)
    for f in range(num_fields):
        grp, j = divmod(f, g)
        tbl[grp, j * v_pad:j * v_pad + v, j * embed_dim:(j + 1) * embed_dim] = w
    return jnp.asarray(tbl)


def _apply_mxu(x, offsets, grouped_table, plan, num_fields, embed_dim, vocab,
               vmem_budget, vmem_cap, target_batch_tile):
    b = x.shape[0]
    g, gw, ng = plan["g"], plan["gw"], plan["ng"]
    v_pad, f_pad = plan["v_pad"], plan["f_pad"]

    # Batch tile: multiple of 8, VMEM-budget aware, >= 2 batch steps when possible.
    per_row = 8 * g + 8 * gw + 8 * g * v_pad   # idx/out double-buffers + one-hot temps
    avail = 0.8 * vmem_budget - plan["table_block_bytes"]
    tb_fit = max(_SUBLANE, (int(avail) // per_row) // _SUBLANE * _SUBLANE)
    tb = min(target_batch_tile, tb_fit, _round_up(b, _SUBLANE))
    if b >= 2 * _SUBLANE:                       # leave >= 2 grid steps for megacore
        tb = min(tb, _round_up(_cdiv(b, 2), _SUBLANE))
    tb = max(_SUBLANE, (tb // _SUBLANE) * _SUBLANE)
    b_pad = _round_up(b, tb)

    # Fold per-field offsets into the indices on the wrapper side; clamp for
    # safety (PyTorch would raise).  -1 padding contributes exact zeros.
    comb = jnp.clip(x.astype(jnp.int32) + offsets.astype(jnp.int32)[None, :],
                    0, vocab - 1)
    idx = jnp.full((b_pad, f_pad), -1, dtype=jnp.int32).at[:b, :num_fields].set(comb)
    idx3 = idx.reshape(b_pad, ng, g).transpose(1, 0, 2)          # (NG, B_pad, G)

    # Generation-aware VMEM limit: never above the device's per-core capacity.
    vmem_limit = int(min(max(plan["table_block_bytes"] + tb * per_row + (16 << 20),
                             32 << 20),
                         vmem_cap - (2 << 20)))

    out = pl.pallas_call(
        _mxu_gather_kernel(g, v_pad),
        out_shape=jax.ShapeDtypeStruct((b_pad, ng * gw), jnp.float32),
        grid=(ng, b_pad // tb),                 # group axis outer -> table slice reused
        in_specs=[
            pl.BlockSpec((None, tb, g), lambda gi, bi: (gi, bi, 0)),          # indices
            pl.BlockSpec((None, g * v_pad, gw), lambda gi, bi: (gi, 0, 0)),   # group table
        ],
        out_specs=pl.BlockSpec((tb, gw), lambda gi, bi: (bi, gi)),            # lane-dense
        compiler_params=pltpu.CompilerParams(
            dimension_semantics=("parallel", "parallel"),
            vmem_limit_bytes=vmem_limit,
        ),
    )(idx3, grouped_table)

    # Strip batch / lane / field padding and restore the PyTorch (B, F, D) layout.
    out = out[:b].reshape(b, ng, gw)[:, :, :g * embed_dim]
    return out.reshape(b, ng * g, embed_dim)[:, :num_fields, :]


# ---------------------------------------------------------------------------
# Path 2: HBM-resident table, manual DMA row gather (large vocab fallback)
# ---------------------------------------------------------------------------

def _dma_gather_kernel(num_fields, tb, n_slots):
    def kernel(idx_ref, table_ref, out_ref, sems):
        # idx_ref:   SMEM (B_pad*F,) int32, scalar-prefetched combined indices
        # table_ref: HBM  (V, D) f32 (memory_space=pl.ANY)
        # out_ref:   VMEM (TB, F, D) f32 output block
        # sems:      DMA semaphores (n_slots, F)
        base = pl.program_id(0) * (tb * num_fields)

        def row_copy(b, f, slot):
            row = idx_ref[base + b * num_fields + f]
            return pltpu.make_async_copy(table_ref.at[row], out_ref.at[b, f],
                                         sems.at[slot, f])

        def start_row(b):
            slot = b % n_slots
            for f in range(num_fields):
                row_copy(b, f, slot).start()

        def wait_row(b):
            slot = b % n_slots
            for f in range(num_fields):
                row_copy(b, f, slot).wait()

        for b in range(min(n_slots, tb)):        # prime n_slots rows of lookahead
            start_row(b)

        @pl.loop(0, tb)
        def _(b):
            wait_row(b)

            @pl.when(b + n_slots < tb)
            def _():
                start_row(b + n_slots)
    return kernel


def _apply_dma(x, offsets, weight, num_fields, embed_dim, vocab, vmem_cap):
    b = x.shape[0]
    tb = min(128, _round_up(b, _SUBLANE))
    b_pad = _round_up(b, tb)
    comb = jnp.clip(x.astype(jnp.int32) + offsets.astype(jnp.int32)[None, :],
                    0, vocab - 1)
    # Pad with a valid row (0): padded rows are fetched then sliced off.
    flat = jnp.zeros((b_pad, num_fields), jnp.int32).at[:b].set(comb).reshape(-1)

    n_slots = 4                                  # >= 4 outstanding row DMAs
    out = pl.pallas_call(
        _dma_gather_kernel(num_fields, tb, n_slots),
        out_shape=jax.ShapeDtypeStruct((b_pad, num_fields, embed_dim), jnp.float32),
        grid_spec=pltpu.PrefetchScalarGridSpec(
            num_scalar_prefetch=1,
            grid=(b_pad // tb,),
            in_specs=[pl.BlockSpec(memory_space=pl.ANY)],        # table stays in HBM
            out_specs=pl.BlockSpec((tb, num_fields, embed_dim),
                                   lambda i, idx_ref: (i, 0, 0)),
            scratch_shapes=[pltpu.SemaphoreType.DMA((n_slots, num_fields))],
        ),
        compiler_params=pltpu.CompilerParams(
            dimension_semantics=("parallel",),
            vmem_limit_bytes=int(min(32 << 20, vmem_cap - (2 << 20))),
        ),
    )(flat, weight)
    return out[:b]


# ---------------------------------------------------------------------------
# Module-equivalent wrapper
# ---------------------------------------------------------------------------

class FeaturesEmbedding:
    """JAX / Pallas-TPU port of the PyTorch FeaturesEmbedding module."""

    def __init__(self, field_dims, embed_dim, key, *,
                 mxu_n_tile=256, target_batch_tile=512):
        # mxu_n_tile: native MXU N-tile (256 on v6e/v7x; pass 128 on v5e).
        self.field_dims = tuple(int(d) for d in field_dims)
        self.num_fields = len(self.field_dims)
        self.embed_dim = int(embed_dim)
        self.vocab = int(sum(self.field_dims))
        self.target_batch_tile = int(target_batch_tile)

        bound = float(np.sqrt(6.0 / (self.vocab + self.embed_dim)))   # xavier_uniform
        self.weight = jax.random.uniform(key, (self.vocab, self.embed_dim),
                                         dtype=jnp.float32,
                                         minval=-bound, maxval=bound)
        self.offsets = jnp.asarray(
            np.array((0, *np.cumsum(self.field_dims)[:-1]), dtype=np.int32))

        self.vmem_cap = _vmem_capacity_bytes()
        self.vmem_budget = max(self.vmem_cap - (8 << 20), 16 << 20)
        self.plan = _mxu_plan(self.num_fields, self.embed_dim, self.vocab,
                              int(mxu_n_tile), self.vmem_budget)
        # Grouped block-diagonal table is built exactly once (not per forward).
        self.grouped_table = (
            _build_grouped_table(self.weight, self.plan, self.num_fields,
                                 self.embed_dim)
            if self.plan["fits"] else None)

    def __call__(self, x, *, path=None):
        if path is None:
            path = "mxu" if self.plan["fits"] else "dma"
        if path == "mxu" and self.plan["fits"]:
            return _apply_mxu(x, self.offsets, self.grouped_table, self.plan,
                              self.num_fields, self.embed_dim, self.vocab,
                              self.vmem_budget, self.vmem_cap,
                              self.target_batch_tile)
        return _apply_dma(x, self.offsets, self.weight, self.num_fields,
                          self.embed_dim, self.vocab, self.vmem_cap)


if __name__ == "__main__":
    field_dims = (10, 20, 30, 40)     # num_fields = 4, vocab = 100
    embed_dim = 16
    batch = 2
    num_fields = len(field_dims)

    key = jax.random.PRNGKey(0)
    k_emb, k_x = jax.random.split(key)

    emb = FeaturesEmbedding(field_dims, embed_dim, k_emb)

    # per-field indices in [0, field_dims[f])
    maxvals = jnp.asarray(field_dims, dtype=jnp.int32)[None, :]
    x = (jax.random.randint(k_x, (batch, num_fields), 0, 1 << 30, dtype=jnp.int32)
         % maxvals).astype(jnp.int32)

    # pure-JAX reference
    ref = emb.weight[x + emb.offsets[None, :]]

    # Path 1: MXU one-hot gather (default dispatch for this tiny vocab).
    out = jax.block_until_ready(emb(x))
    assert out.shape == (batch, num_fields, embed_dim)
    np.testing.assert_allclose(np.asarray(out), np.asarray(ref), rtol=0, atol=1e-6)

    # Path 2: HBM DMA-gather fallback, forced, to validate the large-vocab path.
    out_dma = jax.block_until_ready(emb(x, path="dma"))
    np.testing.assert_allclose(np.asarray(out_dma), np.asarray(ref), rtol=0, atol=0)

    print("KERNEL_OK")
</pallas_src>

<mosaic_0001>
module attributes {stable_mosaic.version = 11 : i64} {
  func.func @kernel(%arg0: i32, %arg1: i32, %arg2: memref<1x8x4xi32, #tpu.memory_space<vmem>>, %arg3: memref<1x512x128xf32, #tpu.memory_space<vmem>>, %arg4: memref<8x128xf32, #tpu.memory_space<vmem>>) attributes {dimension_semantics = [#tpu.dimension_semantics<parallel>, #tpu.dimension_semantics<parallel>], iteration_bounds = array<i64: 1, 1>, scalar_prefetch = 0 : i64, scratch_operands = 0 : i64, tpu.core_type = #tpu.core_type<tc>, window_params = [{transform_indices = @transform_0, window_bounds = array<i64: 1, 8, 4>}, {transform_indices = @transform_1, window_bounds = array<i64: 1, 512, 128>}, {transform_indices = @transform_2, window_bounds = array<i64: 8, 128>}]} {
    %c0 = arith.constant 0 : index
    %c0_0 = arith.constant 0 : index
    %c0_1 = arith.constant 0 : index
    %0 = vector.load %arg2[%c0, %c0_0, %c0_1] : memref<1x8x4xi32, #tpu.memory_space<vmem>>, vector<1x8x4xi32>
    %1 = vector.shape_cast %0 : vector<1x8x4xi32> to vector<8x4xi32>
    %2 = tpu.iota {dimensions = array<i32: 1>} : vector<8x128xi32>
    %3 = vector.extract_strided_slice %1 {offsets = [0, 0], sizes = [8, 1], strides = [1, 1]} : vector<8x4xi32> to vector<8x1xi32>
    %4 = vector.broadcast %3 : vector<8x1xi32> to vector<8x128xi32>
    %5 = arith.cmpi eq, %2, %4 : vector<8x128xi32>
    %6 = arith.extui %5 : vector<8x128xi1> to vector<8x128xi32>
    %7 = arith.sitofp %6 : vector<8x128xi32> to vector<8x128xf32>
    %8 = vector.extract_strided_slice %1 {offsets = [0, 1], sizes = [8, 1], strides = [1, 1]} : vector<8x4xi32> to vector<8x1xi32>
    %9 = vector.broadcast %8 : vector<8x1xi32> to vector<8x128xi32>
    %10 = arith.cmpi eq, %2, %9 : vector<8x128xi32>
    %11 = arith.extui %10 : vector<8x128xi1> to vector<8x128xi32>
    %12 = arith.sitofp %11 : vector<8x128xi32> to vector<8x128xf32>
    %13 = vector.extract_strided_slice %1 {offsets = [0, 2], sizes = [8, 1], strides = [1, 1]} : vector<8x4xi32> to vector<8x1xi32>
    %14 = vector.broadcast %13 : vector<8x1xi32> to vector<8x128xi32>
    %15 = arith.cmpi eq, %2, %14 : vector<8x128xi32>
    %16 = arith.extui %15 : vector<8x128xi1> to vector<8x128xi32>
    %17 = arith.sitofp %16 : vector<8x128xi32> to vector<8x128xf32>
    %18 = vector.extract_strided_slice %1 {offsets = [0, 3], sizes = [8, 1], strides = [1, 1]} : vector<8x4xi32> to vector<8x1xi32>
    %19 = vector.broadcast %18 : vector<8x1xi32> to vector<8x128xi32>
    %20 = arith.cmpi eq, %2, %19 : vector<8x128xi32>
    %21 = arith.extui %20 : vector<8x128xi1> to vector<8x128xi32>
    %22 = arith.sitofp %21 : vector<8x128xi32> to vector<8x128xf32>
    %23 = tpu.concatenate %7, %12, %17, %22 in 1 : vector<8x128xf32>, vector<8x128xf32>, vector<8x128xf32>, vector<8x128xf32> -> vector<8x512xf32>
    %c0_2 = arith.constant 0 : index
    %c0_3 = arith.constant 0 : index
    %c0_4 = arith.constant 0 : index
    %24 = vector.load %arg3[%c0_2, %c0_3, %c0_4] : memref<1x512x128xf32, #tpu.memory_space<vmem>>, vector<1x512x128xf32>
    %25 = vector.shape_cast %24 : vector<1x512x128xf32> to vector<512x128xf32>
    %cst = arith.constant dense<0.000000e+00> : vector<8x128xf32>
    %26 = tpu.matmul %23, %25, %cst {dimension_numbers = #tpu.dot_dimension_numbers<[1], [0], [0], [1], [0, 0, 1, 1], [], []>} : vector<8x512xf32>, vector<512x128xf32>, vector<8x128xf32> -> vector<8x128xf32>
    %c0_5 = arith.constant 0 : index
    %c0_6 = arith.constant 0 : index
    %27 = vector.load %arg4[%c0_5, %c0_6] : memref<8x128xf32, #tpu.memory_space<vmem>>, vector<8x128xf32>
    tpu.vector_store %arg4[%c0_5, %c0_6], %26 {strides = array<i32>} : memref<8x128xf32, #tpu.memory_space<vmem>>, vector<8x128xf32>,
    return
  }
  func.func @transform_0(%arg0: i32, %arg1: i32) -> (i32, i32, i32) {
    %c0_i32 = arith.constant 0 : i32
    %c0_i32_0 = arith.constant 0 : i32
    return %arg0, %arg1, %c0_i32 : i32, i32, i32
  }
  func.func @transform_1(%arg0: i32, %arg1: i32) -> (i32, i32, i32) {
    %c0_i32 = arith.constant 0 : i32
    %c0_i32_0 = arith.constant 0 : i32
    %c0_i32_1 = arith.constant 0 : i32
    return %arg0, %c0_i32, %c0_i32_0 : i32, i32, i32
  }
  func.func @transform_2(%arg0: i32, %arg1: i32) -> (i32, i32) {
    %c0_i32 = arith.constant 0 : i32
    return %arg1, %arg0 : i32, i32
  }
}

</mosaic_0001>

<bundles_post_ra>
// kernel: tpu_custom_call.1
= control target key start
LH: loop header
LB: loop body
LE: loop exit
PB: predicated region body
PF: predicated region fallthrough
CT: control target
= control target key end

     0   :  { %7 = vsyncpa [#allocation3], 0  ;;  %s441_s0 = inlined_call_operand.vmem [shape: s32[1,8,4], index: 0, kind: input, shape index: {}]   ;;  %s442_s1 = inlined_call_operand.hbm [shape: f32[1,512,128], index: 1, kind: input, shape index: {}]   ;;  %s443_s2 = inlined_call_operand.hbm [shape: f32[8,128], index: 2, kind: output, shape index: {}]  }
   0x1   :  { %8 = vsyncpa [#allocation4], 0  ;;  %s408_s9 = smov [#allocation2]  }
   0x2   :  { %s16_s10 = sshll.u32 %s408_s9, 4  ;;  %s17_s10 = int_to_ptr.vmem [resolvable:$true] %s16_s10 }
   0x3   :  { %s372_s11 = scalar_lea.vmem %s17_s10, 8192  ;;  %p377_p1 = scmp.lt.s32.totalorder %s17_s10, %s17_s10 }
   0x4   :  { %p373_p0 = scmp.ne.s32.totalorder %s17_s10, %s372_s11  ;;  %p378_p2 = scmp.lt.s32.totalorder %s372_s11, %s372_s11 }
   0x6   :  { %p379_p3 = por %p378_p2, %p377_p1 }
   0x8   :  { %p380_p4 = pnand %p379_p3, %p373_p0 }
   0xa   :  { %383 = shalt.err (!%p380_p4)
}
   0xb   :  { %s409_s12 = smov 128   ;;  %s410_s13 = smov 8  }
   0xc   :  { %22 = dma.hbm_to_vmem [thread:$0]  %s442_s1, 8192, %s17_s10, [#allocation3], %s409_s12, %s409_s12, %s410_s13  }
   0xd   :  { %404 = dma.done.wait [#allocation3], 8192  }
   0xe   :  { %405 = vsyncadd [#allocation3], 4294959104  ;;  %v411_v0 = vmov 1   ;;  %v412_v1 = vmov 0   ;;  %v26_v2 = vld [vmem:[%s441_s0] sm:$0xff]  ;;  %v84_v3 = vld [vmem:[#allocation2 + $0xf8] sm:$0xff] }
   0xf   :  { %360 = vset.pattern.permute.xlu0 %v411_v0  ;;  %362 = vset.pattern.permute.xlu1 %v412_v1  ;;  %v68_v4 = vld [vmem:[#allocation2 + $0x78] sm:$0xff]  ;;  %v83_v5 = vld [vmem:[#allocation2 + $0xf0] sm:$0xff]  ;;  %v413_v10 = vmov 3   ;;  %v414_v11 = vmov 2   ;;  %v82_v12 = vld [vmem:[#allocation2 + $0xe8] sm:$0xff]  ;;  %s416_s0 = smov [#allocation5]  }
  0x10   :  { %36 = vperm.xlu0 %360, %v26_v2   ;;  %30 = vperm.xlu1 %362, %v26_v2   ;;  %v116_v6 = vld [vmem:[#allocation2 + $0x1f8] sm:$0xff]  ;;  %v67_v8 = vld [vmem:[#allocation2 + $0x70] sm:$0xff]  ;;  %v66_v14 = vld [vmem:[#allocation2 + $0x68] sm:$0xff]  ;;  %s264_s1 = sshll.u32 %s416_s0, 4  ;;  %s265_s1 = int_to_ptr.vmem [resolvable:$true] %s264_s1 }
  0x11   :  { %281 = vmatprep.subr.mxu0 %v84_v3  ;;  %316 = vmatprep.subr.mxu1 %v116_v6  ;;  %v100_v7 = vld [vmem:[#allocation2 + $0x178] sm:$0xff]  ;;  %v115_v9 = vld [vmem:[#allocation2 + $0x1f0] sm:$0xff]  ;;  %v114_v15 = vld [vmem:[#allocation2 + $0x1e8] sm:$0xff]  ;;  %s384_s18 = scalar_lea.vmem %s265_s1, 128  ;;  %p389_p6 = scmp.lt.s32.totalorder %s265_s1, %s265_s1 }
  0x12   :  { %282 = vmatpush3.msra.mxu0 %v68_v4  ;;  %317 = vmatpush3.msra.mxu1 %v100_v7  ;;  %v99_v13 = vld [vmem:[#allocation2 + $0x170] sm:$0xff]  ;;  %v81_v16 = vld [vmem:[#allocation2 + $0xe0] sm:$0xff]  ;;  %v98_v17 = vld [vmem:[#allocation2 + $0x168] sm:$0xff]  ;;  %p385_p5 = scmp.ne.s32.totalorder %s265_s1, %s384_s18  ;;  %p390_p7 = scmp.lt.s32.totalorder %s384_s18, %s384_s18 }
  0x13   :  { %283 = vmatprep.subr.mxu0 %v83_v5  ;;  %318 = vmatprep.subr.mxu1 %v115_v9  ;;  %v65_v18 = vld [vmem:[#allocation2 + $0x60] sm:$0xff]  ;;  %v80_v20 = vld [vmem:[#allocation2 + $0xd8] sm:$0xff]  ;;  %v79_v24 = vld [vmem:[#allocation2 + $0xd0] sm:$0xff]  ;;  %v27_v5 = vlaneseq  ;;  %v415_v9 = vmov 1.0  }
  0x14   :  { %361 = vset.pattern.permute.xlu0 %v413_v10  ;;  %363 = vset.pattern.permute.xlu1 %v414_v11  ;;  %v113_v19 = vld [vmem:[#allocation2 + $0x1e0] sm:$0xff]  ;;  %v64_v22 = vld [vmem:[#allocation2 + $0x58] sm:$0xff]  ;;  %v63_v26 = vld [vmem:[#allocation2 + $0x50] sm:$0xff]  ;;  %p391_p8 = por %p390_p7, %p389_p6 }
  0x15   :  { %48 = vperm.xlu0 %361, %v26_v2   ;;  %42 = vperm.xlu1 %363, %v26_v2   ;;  %v97_v21 = vld [vmem:[#allocation2 + $0x160] sm:$0xff]  ;;  %v112_v23 = vld [vmem:[#allocation2 + $0x1d8] sm:$0xff]  ;;  %v111_v27 = vld [vmem:[#allocation2 + $0x1d0] sm:$0xff]  ;;  %v28_v6 = vand.u32 127, %v27_v5 }
  0x16   :  { %284 = vmatpush3.msra.mxu0 %v67_v8  ;;  %319 = vmatpush3.msra.mxu1 %v99_v13  ;;  %v96_v25 = vld [vmem:[#allocation2 + $0x158] sm:$0xff]  ;;  %v78_v28 = vld [vmem:[#allocation2 + $0xc8] sm:$0xff]  ;;  %v95_v29 = vld [vmem:[#allocation2 + $0x150] sm:$0xff]  ;;  %p392_p9 = pnand %p391_p8, %p385_p5 }
  0x17   :  { %285 = vmatprep.subr.mxu0 %v82_v12  ;;  %320 = vmatprep.subr.mxu1 %v114_v15  ;;  %v62_v30 = vld [vmem:[#allocation2 + $0x48] sm:$0xff]  ;;  %v77_v32 = vld [vmem:[#allocation2 + $0xc0] sm:$0xff]  ;;  %v76_v36 = vld [vmem:[#allocation2 + $0xb8] sm:$0xff] }
  0x18   :  { %286 = vmatpush3.msra.mxu0 %v66_v14  ;;  %321 = vmatpush3.msra.mxu1 %v98_v17  ;;  %v110_v31 = vld [vmem:[#allocation2 + $0x1c8] sm:$0xff]  ;;  %v61_v34 = vld [vmem:[#allocation2 + $0x40] sm:$0xff]  ;;  %v60_v38 = vld [vmem:[#allocation2 + $0x38] sm:$0xff] }
  0x19   :  { %287 = vmatprep.subr.mxu0 %v81_v16  ;;  %322 = vmatprep.subr.mxu1 %v113_v19  ;;  %v94_v33 = vld [vmem:[#allocation2 + $0x148] sm:$0xff]  ;;  %v109_v35 = vld [vmem:[#allocation2 + $0x1c0] sm:$0xff]  ;;  %v108_v39 = vld [vmem:[#allocation2 + $0x1b8] sm:$0xff] }
  0x1a   :  { %288 = vmatpush3.msra.mxu0 %v65_v18  ;;  %323 = vmatpush3.msra.mxu1 %v97_v21  ;;  %v93_v37 = vld [vmem:[#allocation2 + $0x140] sm:$0xff]  ;;  %v75_v40 = vld [vmem:[#allocation2 + $0xb0] sm:$0xff]  ;;  %v92_v41 = vld [vmem:[#allocation2 + $0x138] sm:$0xff] }
  0x1b   :  { %289 = vmatprep.subr.mxu0 %v80_v20  ;;  %324 = vmatprep.subr.mxu1 %v112_v23  ;;  %v59_v42 = vld [vmem:[#allocation2 + $0x30] sm:$0xff]  ;;  %v74_v44 = vld [vmem:[#allocation2 + $0xa8] sm:$0xff]  ;;  %v73_v48 = vld [vmem:[#allocation2 + $0xa0] sm:$0xff] }
  0x1c   :  { %290 = vmatpush3.msra.mxu0 %v64_v22  ;;  %325 = vmatpush3.msra.mxu1 %v96_v25  ;;  %v107_v43 = vld [vmem:[#allocation2 + $0x1b0] sm:$0xff]  ;;  %v58_v46 = vld [vmem:[#allocation2 + $0x28] sm:$0xff]  ;;  %v57_v50 = vld [vmem:[#allocation2 + $0x20] sm:$0xff] }
  0x1d   :  { %291 = vmatprep.subr.mxu0 %v79_v24  ;;  %326 = vmatprep.subr.mxu1 %v111_v27  ;;  %v91_v45 = vld [vmem:[#allocation2 + $0x130] sm:$0xff]  ;;  %v106_v47 = vld [vmem:[#allocation2 + $0x1a8] sm:$0xff]  ;;  %v105_v51 = vld [vmem:[#allocation2 + $0x1a0] sm:$0xff] }
  0x1e   :  { %292 = vmatpush3.msra.mxu0 %v63_v26  ;;  %327 = vmatpush3.msra.mxu1 %v95_v29  ;;  %v90_v49 = vld [vmem:[#allocation2 + $0x128] sm:$0xff]  ;;  %v72_v52 = vld [vmem:[#allocation2 + $0x98] sm:$0xff]  ;;  %v89_v53 = vld [vmem:[#allocation2 + $0x120] sm:$0xff] }
  0x1f   :  { %293 = vmatprep.subr.mxu0 %v78_v28  ;;  %328 = vmatprep.subr.mxu1 %v110_v31  ;;  %v56_v54 = vld [vmem:[#allocation2 + $0x18] sm:$0xff]  ;;  %v71_v56 = vld [vmem:[#allocation2 + $0x90] sm:$0xff]  ;;  %v70_v60 = vld [vmem:[#allocation2 + $0x88] sm:$0xff] }
  0x20   :  { %294 = vmatpush3.msra.mxu0 %v62_v30  ;;  %329 = vmatpush3.msra.mxu1 %v94_v33  ;;  %v104_v55 = vld [vmem:[#allocation2 + $0x198] sm:$0xff]  ;;  %v55_v58 = vld [vmem:[#allocation2 + $0x10] sm:$0xff]  ;;  %v54_v62 = vld [vmem:[#allocation2 + $0x8] sm:$0xff] }
  0x21   :  { %295 = vmatprep.subr.mxu0 %v77_v32  ;;  %330 = vmatprep.subr.mxu1 %v109_v35  ;;  %v88_v57 = vld [vmem:[#allocation2 + $0x118] sm:$0xff]  ;;  %v103_v59 = vld [vmem:[#allocation2 + $0x190] sm:$0xff]  ;;  %v102_v63 = vld [vmem:[#allocation2 + $0x188] sm:$0xff] }
  0x22   :  { %296 = vmatpush3.msra.mxu0 %v61_v34  ;;  %331 = vmatpush3.msra.mxu1 %v93_v37  ;;  %v87_v61 = vld [vmem:[#allocation2 + $0x110] sm:$0xff]  ;;  %v69_v0 = vld [vmem:[#allocation2 + $0x80] sm:$0xff]  ;;  %v86_v1 = vld [vmem:[#allocation2 + $0x108] sm:$0xff] }
  0x23   :  { %297 = vmatprep.subr.mxu0 %v76_v36  ;;  %332 = vmatprep.subr.mxu1 %v108_v39  ;;  %v53_v2 = vld [vmem:[#allocation2] sm:$0xff] }
  0x24   :  { %298 = vmatpush3.msra.mxu0 %v60_v38  ;;  %333 = vmatpush3.msra.mxu1 %v92_v41  ;;  %v101_v3 = vld [vmem:[#allocation2 + $0x180] sm:$0xff] }
  0x25   :  { %299 = vmatprep.subr.mxu0 %v75_v40  ;;  %334 = vmatprep.subr.mxu1 %v107_v43  ;;  %v85_v4 = vld [vmem:[#allocation2 + $0x100] sm:$0xff] }
  0x26   :  { %300 = vmatpush3.msra.mxu0 %v59_v42  ;;  %335 = vmatpush3.msra.mxu1 %v91_v45 }
  0x27   :  { %301 = vmatprep.subr.mxu0 %v74_v44  ;;  %336 = vmatprep.subr.mxu1 %v106_v47 }
  0x28   :  { %302 = vmatpush3.msra.mxu0 %v58_v46  ;;  %337 = vmatpush3.msra.mxu1 %v90_v49 }
  0x29   :  { %303 = vmatprep.subr.mxu0 %v73_v48  ;;  %338 = vmatprep.subr.mxu1 %v105_v51 }
  0x2a   :  { %304 = vmatpush3.msra.mxu0 %v57_v50  ;;  %339 = vmatpush3.msra.mxu1 %v89_v53 }
  0x2b   :  { %305 = vmatprep.subr.mxu0 %v72_v52  ;;  %340 = vmatprep.subr.mxu1 %v104_v55 }
  0x2c   :  { %306 = vmatpush3.msra.mxu0 %v56_v54  ;;  %341 = vmatpush3.msra.mxu1 %v88_v57 }
  0x2d   :  { %307 = vmatprep.subr.mxu0 %v71_v56  ;;  %342 = vmatprep.subr.mxu1 %v103_v59 }
  0x2e   :  { %308 = vmatpush3.msra.mxu0 %v55_v58  ;;  %343 = vmatpush3.msra.mxu1 %v87_v61 }
  0x2f   :  { %309 = vmatprep.subr.mxu0 %v70_v60  ;;  %344 = vmatprep.subr.mxu1 %v102_v63 }
  0x30   :  { %310 = vmatpush3.msra.mxu0 %v54_v62  ;;  %345 = vmatpush3.msra.mxu1 %v86_v1 }
  0x31   :  { %311 = vmatprep.subr.mxu0 %v69_v0  ;;  %346 = vmatprep.subr.mxu1 %v101_v3 }
  0x32   :  { %312 = vmatpush3.msra.mxu0 %v53_v2  ;;  %347 = vmatpush3.msra.mxu1 %v85_v4 }
  0x8b   :  { %v37_v7 = vpop.permute.xlu0 %36  ;;  %v31_v8 = vpop.permute.xlu1 %30 }
  0x8c   :  { %vm32_vm0 = vcmp.eq.s32.totalorder %v28_v6, %v31_v8  ;;  %vm38_vm1 = vcmp.eq.s32.totalorder %v28_v6, %v37_v7 }
  0x8d   :  { %277 = vmatprep.mubr.msk.f32.mxu0 %vm38_vm1, %v415_v9 }
  0x8e   :  { %278 = vmatmul.mubr.msk.f32.vlgmr.msra.gmra.mxu0 %vm32_vm0, %v415_v9 }
  0x90   :  { %v49_v10 = vpop.permute.xlu0 %48  ;;  %v43_v11 = vpop.permute.xlu1 %42 }
  0x91   :  { %vm44_vm2 = vcmp.eq.s32.totalorder %v28_v6, %v43_v11  ;;  %vm50_vm3 = vcmp.eq.s32.totalorder %v28_v6, %v49_v10 }
  0x92   :  { %279 = vmatprep.mubr.msk.f32.mxu1 %vm50_vm3, %v415_v9 }
  0x93   :  { %280 = vmatmul.mubr.msk.f32.vlgmr.msra.gmra.mxu1 %vm44_vm2, %v415_v9 }
 0x14e   :  { %v313_v12 = vpop.f32.mrf.mxu0 }
 0x150   :  { %v314_v13 = vpop.f32.mrf.mxu0 }
 0x151   :  { %v315_v16 = vadd.f32 %v314_v13, %v313_v12 }
 0x153   :  { %v348_v14 = vpop.f32.mrf.mxu1 }
 0x155   :  { %v349_v15 = vpop.f32.mrf.mxu1 }
 0x156   :  { %v350_v17 = vadd.f32 %v349_v15, %v348_v14 }
 0x158   :  { %v254_v18 = vadd.f32 %v350_v17, %v315_v16 }
 0x15a   :  { %257 = vst [vmem:[#allocation5] sm:$0xff] %v254_v18 }
 0x15b   :  { %395 = shalt.err (!%p392_p9)
}
 0x15c   :  { %267 = dma.vmem_to_hbm [thread:$0]  %s265_s1, 128, %s443_s2, [#allocation4]  }
 0x15d   :  { %406 = dma.done.wait [#allocation4], 128  }
 0x15e   :  { %407 = vsyncadd [#allocation4], 4294967168 }
 0x15f   :  { %271 = vsyncpa [#allocation3], 1 }
 0x160   :  { %272 = vsyncpa [#allocation4], 1 }

</bundles_post_ra>
